<compile_context>
chip_gen: v5e
topology: v5e:2x2
jax: 0.10.0
libtpu: 0.0.40
codegen_flags: <defaults>
</compile_context>

<pallas_src>
import jax
import jax.numpy as jnp
from jax.experimental import pallas as pl
from jax.experimental.pallas import tpu as pltpu


def _patch_embed_kernel(x_ref, w_ref, pos_ref, o_ref):
    # x_ref:   (Ms, K)   bf16 - bB images' patches, pre-flattened, lane-dense K
    # w_ref:   (K, Hp)   bf16 - resident (constant index map)
    # pos_ref: (Ms, Hp)  f32  - resident: pos-emb (tiled over bB images) + conv bias
    # o_ref:   (Ms, Hp)  out dtype
    acc = jnp.dot(x_ref[...], w_ref[...], preferred_element_type=jnp.float32)
    o_ref[...] = (acc + pos_ref[...]).astype(o_ref.dtype)


def _pick_images_per_step(batch, n_patches, target_rows=512):
    """Largest divisor of `batch` with bB * n_patches <= target_rows, keeping
    >= 2 grid steps when possible (so both v7x TensorCores get work)."""
    best = 1
    for b in range(1, batch + 1):
        if batch % b:
            continue
        if b * n_patches > target_rows:
            break
        if batch // b >= 2 or batch == 1:
            best = b
    return best


def patch_embeddings_pallas(x_nhwc, conv_weight, conv_bias, pos_emb, patch_size,
                            *, compute_dtype=jnp.bfloat16, out_dtype=None,
                            images_per_step=None):
    """Equivalent of (eval mode, non-hybrid):
         x = Conv2d(C, hidden, kernel=P, stride=P)(x)    # on NCHW data
         x = x.flatten(2).transpose(-1, -2)              # [B, n_patches, hidden]
         x = x + position_embeddings
         x = Dropout(x)                                  # eval -> identity
       taking the activations in NHWC layout (the natural JAX layout).
       Set out_dtype=jnp.bfloat16 if the downstream transformer consumes bf16
       (halves output HBM traffic)."""
    B, H, W, C = x_nhwc.shape
    hidden, Cw, ph_, pw_ = conv_weight.shape
    P = patch_size
    assert ph_ == P and pw_ == P and H % P == 0 and W % P == 0
    nH, nW = H // P, W // P
    n_patches = nH * nW
    out_dtype = x_nhwc.dtype if out_dtype is None else out_dtype

    # Single-channel input: fold the module's 1->3 channel repeat into the
    # weight instead of tiling the activations.
    if C == 1 and Cw != 1:
        conv_weight = jnp.sum(conv_weight, axis=1, keepdims=True)
        Cw = 1
    assert Cw == C

    K = P * P * C
    # Pad hidden to a multiple of 128 -> lane-dense (unmasked) output stores.
    # Production hidden sizes (768/1024/...) are already aligned -> no-op.
    Hp = ((hidden + 127) // 128) * 128

    if images_per_step is None:
        images_per_step = _pick_images_per_step(B, n_patches)
    bB = images_per_step
    assert B % bB == 0
    steps = B // bB
    Ms = bB * n_patches

    # Patchify: (B,H,W,C) -> (steps, Ms, K).  One XLA transpose pass over the
    # activations; the bf16 cast fuses into it.  All reshapes are free.
    xp = x_nhwc.reshape(B, nH, P, nW, P * C)
    xp = jnp.transpose(xp, (0, 1, 3, 2, 4))          # (B, nH, nW, P, P*C)
    xp = xp.reshape(steps, Ms, K).astype(compute_dtype)

    # Weight (hidden, C, Ph, Pw) -> (Ph, Pw, C, hidden) -> (K, Hp), bf16.
    # Flattening order (Ph, Pw, C) matches the patchify order above.
    w = jnp.transpose(conv_weight, (2, 3, 1, 0)).reshape(K, hidden)
    w = w.astype(compute_dtype)
    if Hp != hidden:
        w = jnp.pad(w, ((0, 0), (0, Hp - hidden)))

    # Fold bias into the position embeddings once; tile for bB images / step.
    pos_pb = (pos_emb.reshape(n_patches, hidden).astype(jnp.float32)
              + conv_bias.astype(jnp.float32)[None, :])
    if Hp != hidden:
        pos_pb = jnp.pad(pos_pb, ((0, 0), (0, Hp - hidden)))
    if bB > 1:
        pos_pb = jnp.tile(pos_pb, (bB, 1))

    out = pl.pallas_call(
        _patch_embed_kernel,
        out_shape=jax.ShapeDtypeStruct((steps, Ms, Hp), out_dtype),
        grid=(steps,),
        in_specs=[
            # One whole-image-group slab per grid step (lane-dense K).
            pl.BlockSpec((pl.Squeezed(), Ms, K), lambda s: (s, 0, 0)),
            # Weight and pos+bias: constant block index -> fetched once, resident.
            pl.BlockSpec((K, Hp), lambda s: (0, 0)),
            pl.BlockSpec((Ms, Hp), lambda s: (0, 0)),
        ],
        out_specs=pl.BlockSpec((pl.Squeezed(), Ms, Hp), lambda s: (s, 0, 0)),
        compiler_params=pltpu.CompilerParams(
            dimension_semantics=("parallel",),
            vmem_limit_bytes=32 * 1024 * 1024),
    )(xp, w, pos_pb)

    out = out.reshape(B, n_patches, Hp)
    if Hp != hidden:
        out = out[..., :hidden]
    return out


def patch_embeddings_pallas_nchw(x_nchw, conv_weight, conv_bias, pos_emb, patch_size,
                                 **kwargs):
    """Interface parity with the PyTorch module (NCHW input).  Production
    pipelines should keep activations NHWC and call `patch_embeddings_pallas`."""
    return patch_embeddings_pallas(jnp.transpose(x_nchw, (0, 2, 3, 1)),
                                   conv_weight, conv_bias, pos_emb, patch_size,
                                   **kwargs)


def _reference_nchw(x_nchw, conv_weight, conv_bias, pos_emb, patch_size):
    """Pure-JAX f32 reference, mirrors the PyTorch module exactly (NCHW)."""
    B, C, H, W = x_nchw.shape
    if C == 1 and conv_weight.shape[1] == 3:       # x.repeat(1, 3, 1, 1)
        x_nchw = jnp.tile(x_nchw, (1, 3, 1, 1))
        C = 3
    P = patch_size
    hidden = conv_weight.shape[0]
    nH, nW = H // P, W // P
    patches = x_nchw.reshape(B, C, nH, P, nW, P)
    patches = patches.transpose(0, 2, 4, 1, 3, 5).reshape(B, nH * nW, C * P * P)
    w_flat = conv_weight.reshape(hidden, C * P * P).T
    return patches @ w_flat + conv_bias[None, None, :] + pos_emb


if __name__ == "__main__":
    key = jax.random.PRNGKey(0)
    k_x, k_w, k_b, k_pos, k_x1 = jax.random.split(key, 5)

    # Module-consistent small shapes: img_size=16, patch_size=4, in_channels=3,
    # hidden_size=32 -> n_patches = (16//4)*(16//4) = 16.
    B, C, H, W = 2, 3, 16, 16
    P = 4
    hidden = 32
    n_patches = (H // P) * (W // P)

    x_nchw = jax.random.normal(k_x, (B, C, H, W), dtype=jnp.float32)
    conv_weight = jax.random.normal(k_w, (hidden, C, P, P), dtype=jnp.float32) * 0.05
    conv_bias = jax.random.normal(k_b, (hidden,), dtype=jnp.float32) * 0.01
    pos_emb = jax.random.normal(k_pos, (1, n_patches, hidden), dtype=jnp.float32) * 0.02

    # A JAX port keeps activations NHWC end-to-end; this transpose is test
    # harness glue only (the kernel's native layout is NHWC).
    x_nhwc = jnp.transpose(x_nchw, (0, 2, 3, 1))

    out = patch_embeddings_pallas(x_nhwc, conv_weight, conv_bias, pos_emb, P)
    out = jax.block_until_ready(out)
    ref = _reference_nchw(x_nchw, conv_weight, conv_bias, pos_emb, P)
    assert out.shape == (B, n_patches, hidden)
    assert jnp.allclose(out, ref, atol=2e-2, rtol=2e-2), \
        float(jnp.max(jnp.abs(out - ref)))

    # Single-channel input: the module does x.repeat(1, 3, 1, 1); here the
    # repeat is folded into the weight (exercised via the NCHW adapter).
    x1_nchw = jax.random.normal(k_x1, (B, 1, H, W), dtype=jnp.float32)
    out1 = jax.block_until_ready(
        patch_embeddings_pallas_nchw(x1_nchw, conv_weight, conv_bias, pos_emb, P))
    ref1 = _reference_nchw(x1_nchw, conv_weight, conv_bias, pos_emb, P)
    assert out1.shape == (B, n_patches, hidden)
    assert jnp.allclose(out1, ref1, atol=2e-2, rtol=2e-2), \
        float(jnp.max(jnp.abs(out1 - ref1)))

    print("KERNEL_OK")
</pallas_src>

<mosaic_0001>
module attributes {stable_mosaic.version = 11 : i64} {
  func.func @_patch_embed_kernel(%arg0: i32, %arg1: memref<1x16x48xbf16, #tpu.memory_space<vmem>>, %arg2: memref<48x128xbf16, #tpu.memory_space<vmem>>, %arg3: memref<16x128xf32, #tpu.memory_space<vmem>>, %arg4: memref<1x16x128xf32, #tpu.memory_space<vmem>>) attributes {dimension_semantics = [#tpu.dimension_semantics<parallel>], iteration_bounds = array<i64: 2>, scalar_prefetch = 0 : i64, scratch_operands = 0 : i64, tpu.core_type = #tpu.core_type<tc>, window_params = [{transform_indices = @transform_0, window_bounds = array<i64: 1, 16, 48>}, {pipeline_mode = #tpu.pipeline_mode<synchronous>, transform_indices = @transform_1, window_bounds = array<i64: 48, 128>}, {pipeline_mode = #tpu.pipeline_mode<synchronous>, transform_indices = @transform_2, window_bounds = array<i64: 16, 128>}, {transform_indices = @transform_3, window_bounds = array<i64: 1, 16, 128>}]} {
    %c0 = arith.constant 0 : index
    %c0_0 = arith.constant 0 : index
    %c0_1 = arith.constant 0 : index
    %0 = vector.load %arg1[%c0, %c0_0, %c0_1] : memref<1x16x48xbf16, #tpu.memory_space<vmem>>, vector<1x16x48xbf16>
    %1 = vector.shape_cast %0 : vector<1x16x48xbf16> to vector<16x48xbf16>
    %c0_2 = arith.constant 0 : index
    %c0_3 = arith.constant 0 : index
    %2 = vector.load %arg2[%c0_2, %c0_3] : memref<48x128xbf16, #tpu.memory_space<vmem>>, vector<48x128xbf16>
    %cst = arith.constant dense<0.000000e+00> : vector<16x128xf32>
    %3 = tpu.matmul %1, %2, %cst {dimension_numbers = #tpu.dot_dimension_numbers<[1], [0], [0], [1], [0, 0, 1, 1], [], []>} : vector<16x48xbf16>, vector<48x128xbf16>, vector<16x128xf32> -> vector<16x128xf32>
    %c0_4 = arith.constant 0 : index
    %c0_5 = arith.constant 0 : index
    %4 = vector.load %arg3[%c0_4, %c0_5] : memref<16x128xf32, #tpu.memory_space<vmem>>, vector<16x128xf32>
    %5 = arith.addf %3, %4 : vector<16x128xf32>
    %c0_6 = arith.constant 0 : index
    %c0_7 = arith.constant 0 : index
    %c0_8 = arith.constant 0 : index
    %6 = vector.load %arg4[%c0_6, %c0_7, %c0_8] : memref<1x16x128xf32, #tpu.memory_space<vmem>>, vector<1x16x128xf32>
    %7 = vector.shape_cast %6 : vector<1x16x128xf32> to vector<16x128xf32>
    %8 = vector.shape_cast %5 : vector<16x128xf32> to vector<1x16x128xf32>
    tpu.vector_store %arg4[%c0_6, %c0_7, %c0_8], %8 {strides = array<i32>} : memref<1x16x128xf32, #tpu.memory_space<vmem>>, vector<1x16x128xf32>,
    return
  }
  func.func @transform_0(%arg0: i32) -> (i32, i32, i32) {
    %c0_i32 = arith.constant 0 : i32
    %c0_i32_0 = arith.constant 0 : i32
    %c0_i32_1 = arith.constant 0 : i32
    return %arg0, %c0_i32, %c0_i32_0 : i32, i32, i32
  }
  func.func @transform_1(%arg0: i32) -> (i32, i32) {
    %c0_i32 = arith.constant 0 : i32
    %c0_i32_0 = arith.constant 0 : i32
    %c0_i32_1 = arith.constant 0 : i32
    return %c0_i32, %c0_i32_0 : i32, i32
  }
  func.func @transform_2(%arg0: i32) -> (i32, i32) {
    %c0_i32 = arith.constant 0 : i32
    %c0_i32_0 = arith.constant 0 : i32
    %c0_i32_1 = arith.constant 0 : i32
    return %c0_i32, %c0_i32_0 : i32, i32
  }
  func.func @transform_3(%arg0: i32) -> (i32, i32, i32) {
    %c0_i32 = arith.constant 0 : i32
    %c0_i32_0 = arith.constant 0 : i32
    %c0_i32_1 = arith.constant 0 : i32
    return %arg0, %c0_i32, %c0_i32_0 : i32, i32, i32
  }
}

</mosaic_0001>

<bundles_post_ra>
// kernel: tpu_custom_call.1
= control target key start
LH: loop header
LB: loop body
LE: loop exit
PB: predicated region body
PF: predicated region fallthrough
CT: control target
= control target key end

     0   :  { %8 = vsyncpa [#allocation3], 0  ;;  %s838_s0 = inlined_call_operand.hbm [shape: bf16[2,16,48], index: 0, kind: input, shape index: {}]   ;;  %s839_s1 = inlined_call_operand.hbm [shape: bf16[48,128], index: 1, kind: input, shape index: {}]   ;;  %s840_s2 = inlined_call_operand.hbm [shape: f32[16,128], index: 2, kind: input, shape index: {}]   ;;  %s841_s3 = inlined_call_operand.hbm [shape: f32[2,16,128], index: 3, kind: output, shape index: {}]  }
   0x1   :  { %10 = vsyncpa [#allocation3 + $0x1], 0 }
   0x2   :  { %11 = vsyncpa [#allocation6], 0 }
   0x3   :  { %12 = vsyncpa [#allocation4], 0 }
   0x4   :  { %14 = vsyncpa [#allocation4 + $0x1], 0  ;;  %s690_s12 = smov 0   ;;  %s692_s13 = smov 0  }
   0x5   :  { %s694_s14 = smov 0   ;;  %s696_s15 = smov 0  }
   0x6 LB: > { %s711_s16 = sadd.s32 4294967295, %s660_s15   ;;  %s386_s17 = sadd.s32 4294967294, %s660_s15   ;;  %s660_s15 = sphi %s696_s15, %s851_s15   ;;  %s656_s14 = sphi %s694_s14, %s850_s14   ;;  %s652_s13 = sphi %s692_s13, %s849_s13   ;;  %s648_s12 = sphi %s690_s12, %s848_s12  }
   0x7   : > { %p40_p0 = scmp.ne.s32.totalorder %s652_s13, %s648_s12  ;;  %p41_p1 = scmp.eq.s32.totalorder %s711_s16, 0 }
   0x8   : > { %p106_p2 = scmp.eq.s32.totalorder %s711_s16, 1  ;;  %p112_p3 = scmp.eq.s32.totalorder %s386_s17, 1 }
   0x9   : > { %p720_p4 = por %p41_p1, %p40_p0  ;;  %p387_p5 = scmp.ge.s32.totalorder %s660_s15, 1 }
   0xa   : > { %p725_p6 = por %p112_p3, %p40_p0  ;;  %p119_p7 = scmp.lt.s32.totalorder %s660_s15, 3 }
   0xb   : > { %s130_s22 = sshll.u32 %s839_s1, 4  ;;  %s662_s24 = smov [#allocation5]   ;;  %s131_s22 = int_to_ptr.hbm [resolvable:$true] %s130_s22 }
   0xc   : > { %p733_p8 = pnand %p387_p5, %p119_p7  ;;  %s132_s25 = sshll.u32 %s662_s24, 4  ;;  %s133_s25 = int_to_ptr.vmem [resolvable:$true] %s132_s25 }
   0xd   : > { %s144_s28 = sshll.u32 %s840_s2, 4  ;;  %s663_s29 = smov 64   ;;  %s145_s28 = int_to_ptr.hbm [resolvable:$true] %s144_s28 }
   0xe   : > { %p439_p9 = pneg %p733_p8  ;;  %s664_s30 = smov 4  }
   0xf   : > { %s665_s4 = smov [#allocation7]   ;;  %s666_s6 = smov 128  }
  0x10   : > { %p440_p10 = pnand %p439_p9, %p41_p1  ;;  %s146_s5 = sshll.u32 %s665_s4, 4  ;;  %s147_s5 = int_to_ptr.vmem [resolvable:$true] %s146_s5 }
  0x11   : > { %s667_s7 = smov 8   ;;  %s749_s8 = sadd.s32 1, %s660_s15  }
  0x12   : > { %442 = dma.hbm_to_vmem [thread:$0]  (!%p440_p10), %s131_s22, 384, %s133_s25, [#allocation6], %s663_s29, %s663_s29, %s664_s30  }
  0x13   : > { %445 = dma.hbm_to_vmem [thread:$0]  (!%p440_p10), %s145_s28, 256, %s147_s5, [#allocation6], %s666_s6, %s666_s6, %s667_s7  }
  0x14   : > { %s24_s9 = ssub.s32 %s660_s15, %s749_s8  ;;  %s27_s10 = sadd.s32 1, %s656_s14 }
  0x15   : > { %p25_p12 = scmp.eq.s32.totalorder %s24_s9, 0  ;;  %p34_p13 = scmp.ne.s32.totalorder %s656_s14, %s652_s13 }
  0x16   : > { %p35_p0 = scmp.eq.s32.totalorder %s660_s15, 0  ;;  %p456_p7 = scmp.lt.s32.totalorder %s660_s15, 2 }
  0x17   : > { %s758_s11 = scalar_select %p25_p12, %s656_s14, %s27_s10  }
  0x18   : > { %p36_p3 = por %p35_p0, %p34_p13  ;;  %p762_p5 = por %p106_p2, %p34_p13 }
  0x19   : > { %s160_s20 = sand.u32 1, %s656_s14   ;;  %s421_s22 = sshll.u32 %s660_s15, 3 }
  0x1a   : > { %s391_s21 = sshll.u32 %s160_s20, 3  ;;  %s169_s26 = scalar_lea.hbm %s838_s0, %s421_s22 }
  0x1b   : > { %s164_s27 = scalar_lea.vmem [#allocation2], %s391_s21  ;;  %s170_s4 = sshll.u32 %s169_s26, 4  ;;  %s171_s4 = int_to_ptr.hbm [resolvable:$true] %s170_s4 }
  0x1c   : > { %s172_s28 = sshll.u32 %s164_s27, 4  ;;  %p772_p9 = pnand %p456_p7, %p36_p3  ;;  %s173_s28 = int_to_ptr.vmem [resolvable:$true] %s172_s28 }
  0x1d   : > { %s161_s6 = scalar_lea.sflag [#allocation3], %s160_s20  ;;  %s560_s7 = sshra.s32 %s171_s4, 4  ;;  %s561_s7 = int_to_ptr.hbm [resolvable:$true] %s560_s7 }
  0x1e   : > { %s562_s9 = scalar_lea.hbm %s561_s7, 8  ;;  %p564_p10 = pneg %p772_p9 }
  0x1f   : > { %p563_p2 = scmp.ne.s32.totalorder %s561_s7, %s562_s9  ;;  %s567_s22 = scalar_lea.hbm %s838_s0, 16 }
  0x20   : > { %p568_p0 = scmp.lt.s32.totalorder %s561_s7, %s838_s0  ;;  %p569_p3 = scmp.lt.s32.totalorder %s567_s22, %s562_s9 }
  0x21   : > { %p565_p12 = pnand %p564_p10, %p563_p2 }
  0x22   : > { %p570_p7 = por %p569_p3, %p568_p0 }
  0x23   : > { %p566_p13 = pneg %p565_p12 }
  0x25   : > { %p571_p11 = pnand %p570_p7, %p566_p13 }
  0x27   : > { %574 = shalt.err (!%p571_p11)
}
  0x28   : > { %449 = dma.hbm_to_vmem [thread:$0]  (!%p772_p9), %s171_s4, 128, %s173_s28, %s161_s6, %s663_s29, %s663_s29, %s664_s30  }
  0x29   : > { %184 = sbr.rel (%p733_p8) target bundleno = 201 (0xc9), region = 32  ;;  %s792_s20 = sand.u32 (!%p733_p8), 1, %s652_s13  }
  0x2a   : > { %s395_s26 = sshll.u32 (!%p733_p8), %s792_s20, 3  ;;  %s187_s27 = scalar_lea.sflag (!%p733_p8), [#allocation3], %s792_s20 }
  0x2b   : > { %s190_s7 = scalar_lea.vmem (!%p733_p8), [#allocation2], %s395_s26 }
  0x2e   : > { %635 = dma.done.wait (%p720_p4), %s187_s27, 128  }
  0x2f   : > { %637 = vsyncadd (%p720_p4), %s187_s27, 4294967168 }
  0x30   : > { %639 = dma.done.wait (%p41_p1), [#allocation6], 640  }
  0x31   : > { %641 = vsyncadd (%p41_p1), [#allocation6], 4294966656  ;;  %v425_v0 = vld [vmem:[#allocation5 + $0x10] sm:$0xff]  ;;  %v424_v1 = vld [vmem:[#allocation5 + $0x8] sm:$0xff]  ;;  %vm258_vm0 = vcmask 392192   ;;  %s398_s23 = sshll.u32 %s792_s20, 4 }
  0x32   : > { %267 = vmatpush.bf16.msra.mxu0 %v425_v0  ;;  %v423_v2 = vld [vmem:[#allocation5] sm:$0xff]  ;;  %v422_v3 = vld [vmem:[%s190_s7] sm:$0xff]  ;;  %s426_s18 = sshll.u32 %s711_s16, 4  ;;  %s223_s4 = scalar_lea.vmem [#allocation8], %s398_s23 }
  0x33   : > { %v233_v4 = vld [vmem:[#allocation7] sm:$0xff]  ;;  %s290_s28 = scalar_lea.hbm %s841_s3, %s426_s18  ;;  %s291_s5 = sshll.u32 %s223_s4, 4  ;;  %v234_v7 = vld [vmem:[#allocation7 + $0x8] sm:$0xff]  ;;  %s292_s5 = int_to_ptr.vmem [resolvable:$true] %s291_s5 }
  0x34   : > { %s293_s6 = sshll.u32 %s290_s28, 4  ;;  %s279_s9 = scalar_lea.sflag [#allocation4], %s792_s20  ;;  %s294_s6 = int_to_ptr.hbm [resolvable:$true] %s293_s6 }
  0x35   : > { %s604_s10 = sshra.s32 %s294_s6, 4  ;;  %s610_s24 = scalar_lea.hbm %s841_s3, 32  ;;  %s605_s10 = int_to_ptr.hbm [resolvable:$true] %s604_s10 }
  0x36   : > { %268 = vmatpush.bf16.msra.mxu0 %v424_v1  ;;  %s606_s16 = scalar_lea.hbm %s605_s10, 16  ;;  %p611_p11 = scmp.lt.s32.totalorder %s605_s10, %s841_s3 }
  0x37   : > { %p607_p1 = scmp.ne.s32.totalorder %s605_s10, %s606_s16  ;;  %p612_p9 = scmp.lt.s32.totalorder %s610_s24, %s606_s16 }
  0x39   : > { %p608_p4 = pnand %p607_p1, %p762_p5  ;;  %p613_p2 = por %p612_p9, %p611_p11 }
  0x3a   : > { %269 = vmatpush.bf16.msra.mxu0 %v423_v2 }
  0x3b   : > { %p609_p8 = pneg %p608_p4 }
  0x3d   : > { %415 = vmatmul.msk.bf16.vlgmr.msra.gmra.mxu0 %vm258_vm0, %v422_v3  ;;  %p614_p10 = pnand %p613_p2, %p609_p8 }
  0xba   : > { %v271_v5 = vpop.f32.mrf.mxu0 }
  0xbb   : > { %v272_v6 = vadd.f32 %v271_v5, %v233_v4 }
  0xbd   : > { %276 = vst [vmem:[%s223_s4] sm:$0xff] %v272_v6 }
  0xc2   : > { %v273_v8 = vpop.f32.mrf.mxu0 }
  0xc3   : > { %v274_v9 = vadd.f32 %v273_v8, %v234_v7 }
  0xc5   : > { %277 = vst [vmem:[%s223_s4 + $0x8] sm:$0xff] %v274_v9 }
  0xc6   : > { %617 = shalt.err (!%p614_p10)
}
  0xc7   : > { %s668_s20 = smov 128   ;;  %s669_s27 = smov 8  }
  0xc8   : > { %437 = dma.vmem_to_hbm [thread:$0]  (%p762_p5), %s292_s5, 256, %s294_s6, %s279_s9, %s668_s20, %s668_s20, %s669_s27  }
  0xc9 PF: > { %s308_s7 = sand.u32 1, %s648_s12   ;;  %p847_p12 = scmp.ge.s32.totalorder %s660_s15, 2 }
  0xca   : > { %s309_s23 = scalar_lea.sflag [#allocation4], %s308_s7 }
  0xcb   : > { %p451_p13 = pnand %p847_p12, %p725_p6 }
  0xcd   : > { %p452_p0 = pneg %p451_p13 }
  0xcf   : > { %643 = dma.done.wait (%p452_p0), %s309_s23, 256  }
  0xd0   : > { %645 = vsyncadd (%p452_p0), %s309_s23, 4294967040  ;;  %p17_p3 = scmp.ge.s32.totalorder %s749_s8, 4   ;;  %s848_s12 = smov %s652_s13 }
  0xd1   : > { %s849_s13 = smov %s656_s14  ;;  %s850_s14 = smov %s758_s11 }
  0xd2   : > { %s851_s15 = smov %s749_s8  ;;  %19 = sbr.rel (!%p17_p3) target bundleno = 6 (0x6), region = 85 }
  0xd7   :  { %315 = vsyncpa [#allocation3], 1 }
  0xd8   :  { %317 = vsyncpa [#allocation3 + $0x1], 1 }
  0xd9   :  { %318 = vsyncpa [#allocation6], 1 }
  0xda   :  { %319 = vsyncpa [#allocation4], 1 }
  0xdb   :  { %321 = vsyncpa [#allocation4 + $0x1], 1 }

</bundles_post_ra>
